<compile_context>
chip_gen: v7x
topology: tpu7x:2x2x1
jax: 0.10.0
libtpu: 0.0.40
codegen_flags: <defaults>
</compile_context>

<pallas_src>
import functools

import jax
import jax.numpy as jnp
from jax import lax
from jax.experimental import pallas as pl
from jax.experimental.pallas import tpu as pltpu


# --------------------------------------------------------------------------
# VMEM sizing helpers (padded bytes, generation aware).
# --------------------------------------------------------------------------
def _vmem_capacity_bytes():
    """Per-core VMEM capacity; conservative fallback if the query fails."""
    try:
        info = pltpu.get_tpu_info()
        for attr in ("vmem_capacity_bytes", "vmem_bytes", "vmem_size_bytes"):
            v = getattr(info, attr, None)
            if v:
                return int(v)
    except Exception:
        pass
    return 64 * 1024 * 1024   # v7x per-TensorCore VMEM (smallest of v5e/v6e/v7x)


def _per_sample_vmem_bytes(K, itemsize=4):
    """Padded VMEM bytes one sample costs inside the kernel.

    A (K,K) f32 tile occupies ceil(K/8)*8 x ceil(K/128)*128 words in VMEM
    (4x raw for K=32).  Count: 2 matrix input streams x 2 pipeline buffers,
    ~4 live (TB,K,K) temporaries (products / broadcast evals / diffs), and the
    two (TB,1,K) eval streams (each row pads to an (8,128) tile).
    """
    sub = -(-K // 8) * 8
    lane = -(-K // 128) * 128
    mat_tile = sub * lane * itemsize
    ev_tile = 8 * lane * itemsize
    return mat_tile * (2 * 2 + 4) + ev_tile * 2 * 2


def _pick_block_batch(N, K, vmem_cap_bytes):
    budget = int(vmem_cap_bytes * 0.7)          # headroom for compiler scratch
    per_sample = _per_sample_vmem_bytes(K)
    tb = max(1, min(N, budget // per_sample))
    # Keep >= 2 grid steps so the "parallel" axis can shard across v7x's two
    # TensorCores; costs one extra ~0.35us step on single-core v5e/v6e.
    if N >= 2:
        tb = min(tb, -(-N // 2))
    # Prefer a tile size that divides N so the jnp.pad copies of the (N,K,K)
    # inputs are never materialized (as long as it doesn't halve the tile).
    lo = max(1, tb // 2)
    for d in range(tb, lo - 1, -1):
        if N % d == 0:
            return d
    return tb


# --------------------------------------------------------------------------
# Kernel.
# --------------------------------------------------------------------------
def _surfmnet_kernel(c12_ref, c21_ref, e1_ref, e2_ref, o_ref,
                     *, w_bij, w_orth, w_lap, mm_dtype):
    """One grid step: raw (unweighted, un-normalized) sums over TB samples."""
    f32 = jnp.float32
    A = c12_ref[...]          # (TB, K, K)  C12 tile, f32
    B = c21_ref[...]          # (TB, K, K)  C21 tile, f32
    TB, K, _ = A.shape

    # Optional bf16 operands for the MXU (accumulation stays f32).
    Am = A.astype(mm_dtype)
    Bm = B.astype(mm_dtype)

    def fro2(x):              # sum of squares over the whole tile -> scalar
        return jnp.sum(x * x)

    lane = lax.broadcasted_iota(jnp.int32, (8, 128), 1)
    vals = jnp.zeros((8, 128), f32)

    if w_bij > 0 or w_orth > 0:
        eyeK = jnp.eye(K, dtype=f32)     # (K,K), built once per tile

    if w_bij > 0:
        # sum_b ||C12 C21 - I||^2 + ||C21 C12 - I||^2 via the trace identity
        # ||M - I||^2 = ||M||^2 - 2 tr(M) + K  (no diff tensors, no eye batch).
        ab = jnp.einsum('bij,bjk->bik', Am, Bm, preferred_element_type=f32)
        bij = fro2(ab) - 2.0 * jnp.sum(ab * eyeK)
        ba = jnp.einsum('bij,bjk->bik', Bm, Am, preferred_element_type=f32)
        bij = bij + fro2(ba) - 2.0 * jnp.sum(ba * eyeK) + 2.0 * TB * K
        vals = vals + jnp.where(lane == 0, bij, 0.0)

    if w_orth > 0:
        # ||C^T C - I||^2 = ||C^T C||^2 - 2 ||C||_F^2 + K.
        # Contraction on the row axis ('bij,bik->bjk') avoids materializing C^T.
        ata = jnp.einsum('bij,bik->bjk', Am, Am, preferred_element_type=f32)
        orth = fro2(ata) - 2.0 * fro2(A)
        btb = jnp.einsum('bij,bik->bjk', Bm, Bm, preferred_element_type=f32)
        orth = orth + fro2(btb) - 2.0 * fro2(B) + 2.0 * TB * K
        vals = vals + jnp.where(lane == 1, orth, 0.0)

    if w_lap > 0:
        e1r = e1_ref[...]     # (TB, 1, K)  evals_1 row form (scales columns)
        e2r = e2_ref[...]     # (TB, 1, K)
        # Column forms (values varying along sublanes) built in-kernel:
        # sublane-broadcast (1->K) then transpose of the minor two dims (XLU).
        e1c = jnp.swapaxes(jnp.broadcast_to(e1r, (TB, K, K)), 1, 2)  # [b,i,j]=e1[b,i]
        e2c = jnp.swapaxes(jnp.broadcast_to(e2r, (TB, K, K)), 1, 2)  # [b,i,j]=e2[b,i]
        lap = fro2(A * e1r - e2c * A)
        lap = lap + fro2(B * e2r - e1c * B)
        vals = vals + jnp.where(lane == 2, lap, 0.0)

    # Lane-dense partial-sum block for this grid step.  Each scalar is
    # replicated across the 8 sublanes; the wrapper reads sublane 0 only.
    o_ref[0] = vals


# --------------------------------------------------------------------------
# Wrapper.
# --------------------------------------------------------------------------
def surfmnet_loss(C12, C21, evals_1, evals_2,
                  w_bij=1.0, w_orth=1.0, w_lap=0.001,
                  block_batch=None, matmul_dtype=jnp.float32):
    assert w_bij >= 0 and w_orth >= 0 and w_lap >= 0
    N, K, K2 = C12.shape
    assert K == K2 and C21.shape == (N, K, K)
    assert evals_1.shape == (N, K) and evals_2.shape == (N, K)

    f32 = jnp.float32
    C12 = C12.astype(f32)
    C21 = C21.astype(f32)
    e1 = evals_1.astype(f32).reshape(N, 1, K)   # free metadata reshape in HBM
    e2 = evals_2.astype(f32).reshape(N, 1, K)

    vmem_cap = _vmem_capacity_bytes()
    if block_batch is None:
        TB = _pick_block_batch(N, K, vmem_cap)
    else:
        TB = max(1, int(block_batch))

    G = pl.cdiv(N, TB)
    N_pad = G * TB
    P = N_pad - N                       # zero-padded samples (fallback path)
    if P:
        C12 = jnp.pad(C12, ((0, P), (0, 0), (0, 0)))
        C21 = jnp.pad(C21, ((0, P), (0, 0), (0, 0)))
        e1 = jnp.pad(e1, ((0, P), (0, 0), (0, 0)))
        e2 = jnp.pad(e2, ((0, P), (0, 0), (0, 0)))

    kernel = functools.partial(_surfmnet_kernel,
                               w_bij=w_bij, w_orth=w_orth, w_lap=w_lap,
                               mm_dtype=matmul_dtype)

    mat_spec = pl.BlockSpec((TB, K, K), lambda n: (n, 0, 0))
    ev_spec = pl.BlockSpec((TB, 1, K), lambda n: (n, 0, 0))
    out_spec = pl.BlockSpec((1, 8, 128), lambda n: (n, 0, 0))

    # Scoped VMEM limit: generation-aware, with headroom above the tile budget.
    vmem_limit = max(min(int(vmem_cap * 0.85), 100 * 1024 * 1024),
                     32 * 1024 * 1024)

    partials = pl.pallas_call(
        kernel,
        out_shape=jax.ShapeDtypeStruct((G, 8, 128), f32),
        grid_spec=pltpu.PrefetchScalarGridSpec(
            num_scalar_prefetch=0,
            grid=(G,),
            in_specs=[mat_spec, mat_spec, ev_spec, ev_spec],
            out_specs=out_spec),
        compiler_params=pltpu.CompilerParams(
            dimension_semantics=("parallel",),
            vmem_limit_bytes=vmem_limit),
    )(C12, C21, e1, e2)

    # Final reduction over grid blocks + padding correction + weights / mean.
    totals = jnp.sum(partials, axis=0)[0]          # (128,), read sublane 0 only
    inv_n = 1.0 / N
    eye_pad_corr = 2.0 * K * P    # each zero-padded sample adds K to both ||.-I||^2 terms

    losses = {}
    if w_bij > 0:
        losses["l_bij"] = w_bij * (totals[0] - eye_pad_corr) * inv_n
    if w_orth > 0:
        losses["l_orth"] = w_orth * (totals[1] - eye_pad_corr) * inv_n
    if w_lap > 0:
        losses["l_lap"] = w_lap * totals[2] * inv_n
    return losses


# --------------------------------------------------------------------------
# Pure-JAX reference mirroring the PyTorch module.
# --------------------------------------------------------------------------
def _reference_surfmnet_loss(C12, C21, evals_1, evals_2,
                             w_bij=1.0, w_orth=1.0, w_lap=0.001):
    N, K, _ = C12.shape
    eye = jnp.eye(K, dtype=jnp.float32)[None]

    def crit(a, b):
        return jnp.mean(jnp.sum(jnp.abs(a - b) ** 2, axis=(-2, -1)))

    out = {}
    out["l_bij"] = w_bij * (crit(jnp.einsum('nij,njk->nik', C12, C21), eye)
                            + crit(jnp.einsum('nij,njk->nik', C21, C12), eye))
    out["l_orth"] = w_orth * (crit(jnp.einsum('nji,njk->nik', C12, C12), eye)
                              + crit(jnp.einsum('nji,njk->nik', C21, C21), eye))
    lap = crit(jnp.einsum('abc,ac->abc', C12, evals_1),
               jnp.einsum('ab,abc->abc', evals_2, C12))
    lap += crit(jnp.einsum('abc,ac->abc', C21, evals_2),
                jnp.einsum('ab,abc->abc', evals_1, C21))
    out["l_lap"] = w_lap * lap
    return out


if __name__ == "__main__":
    key = jax.random.PRNGKey(0)
    k1, k2, k3, k4 = jax.random.split(key, 4)

    N, K = 2, 32  # small batch of K x K functional maps
    C12 = jax.random.normal(k1, (N, K, K), dtype=jnp.float32)
    C21 = jax.random.normal(k2, (N, K, K), dtype=jnp.float32)
    evals_1 = jnp.abs(jax.random.normal(k3, (N, K), dtype=jnp.float32))
    evals_2 = jnp.abs(jax.random.normal(k4, (N, K), dtype=jnp.float32))

    losses = surfmnet_loss(C12, C21, evals_1, evals_2)
    losses = jax.tree_util.tree_map(jax.block_until_ready, losses)
    ref = _reference_surfmnet_loss(C12, C21, evals_1, evals_2)
    for name in ("l_bij", "l_orth", "l_lap"):
        assert jnp.allclose(losses[name], ref[name], rtol=1e-4, atol=1e-3), (
            name, losses[name], ref[name])

    # Explicit tile size on a ragged batch (exercises the pad fallback path).
    N2 = 5
    kk = jax.random.split(jax.random.PRNGKey(1), 4)
    C12b = jax.random.normal(kk[0], (N2, K, K), dtype=jnp.float32)
    C21b = jax.random.normal(kk[1], (N2, K, K), dtype=jnp.float32)
    e1b = jnp.abs(jax.random.normal(kk[2], (N2, K), dtype=jnp.float32))
    e2b = jnp.abs(jax.random.normal(kk[3], (N2, K), dtype=jnp.float32))
    losses2 = surfmnet_loss(C12b, C21b, e1b, e2b, block_batch=2)
    losses2 = jax.tree_util.tree_map(jax.block_until_ready, losses2)
    ref2 = _reference_surfmnet_loss(C12b, C21b, e1b, e2b)
    for name in ("l_bij", "l_orth", "l_lap"):
        assert jnp.allclose(losses2[name], ref2[name], rtol=1e-4, atol=1e-3), (
            name, losses2[name], ref2[name])

    # Auto-sized tiles: divisor heuristic splits N=12 without any padding copies.
    N3 = 12
    kk3 = jax.random.split(jax.random.PRNGKey(2), 4)
    C12c = jax.random.normal(kk3[0], (N3, K, K), dtype=jnp.float32)
    C21c = jax.random.normal(kk3[1], (N3, K, K), dtype=jnp.float32)
    ev1c = jnp.abs(jax.random.normal(kk3[2], (N3, K), dtype=jnp.float32))
    ev2c = jnp.abs(jax.random.normal(kk3[3], (N3, K), dtype=jnp.float32))
    losses3 = surfmnet_loss(C12c, C21c, ev1c, ev2c)
    losses3 = jax.tree_util.tree_map(jax.block_until_ready, losses3)
    ref3 = _reference_surfmnet_loss(C12c, C21c, ev1c, ev2c)
    for name in ("l_bij", "l_orth", "l_lap"):
        assert jnp.allclose(losses3[name], ref3[name], rtol=1e-4, atol=1e-3), (
            name, losses3[name], ref3[name])

    # Optional bf16-operand fast path (MXU-native matmuls, f32 accumulation);
    # validated against the f32 reference with a looser tolerance.
    losses_bf = surfmnet_loss(C12c, C21c, ev1c, ev2c, matmul_dtype=jnp.bfloat16)
    losses_bf = jax.tree_util.tree_map(jax.block_until_ready, losses_bf)
    for name in ("l_bij", "l_orth", "l_lap"):
        assert jnp.allclose(losses_bf[name], ref3[name], rtol=2e-2, atol=1e-1), (
            name, losses_bf[name], ref3[name])

    print("KERNEL_OK")
</pallas_src>

<mosaic_0001>
module attributes {stable_mosaic.version = 11 : i64} {
  func.func @_surfmnet_kernel(%arg0: i32, %arg1: memref<1x32x32xf32, #tpu.memory_space<vmem>>, %arg2: memref<1x32x32xf32, #tpu.memory_space<vmem>>, %arg3: memref<1x1x32xf32, #tpu.memory_space<vmem>>, %arg4: memref<1x1x32xf32, #tpu.memory_space<vmem>>, %arg5: memref<1x8x128xf32, #tpu.memory_space<vmem>>) attributes {dimension_semantics = [#tpu.dimension_semantics<parallel>], iteration_bounds = array<i64: 2>, scalar_prefetch = 0 : i64, scratch_operands = 0 : i64, tpu.core_type = #tpu.core_type<tc>, window_params = [{transform_indices = @transform_0, window_bounds = array<i64: 1, 32, 32>}, {transform_indices = @transform_1, window_bounds = array<i64: 1, 32, 32>}, {transform_indices = @transform_2, window_bounds = array<i64: 1, 1, 32>}, {transform_indices = @transform_3, window_bounds = array<i64: 1, 1, 32>}, {transform_indices = @transform_4, window_bounds = array<i64: 1, 8, 128>}]} {
    %c0 = arith.constant 0 : index
    %c0_0 = arith.constant 0 : index
    %c0_1 = arith.constant 0 : index
    %0 = vector.load %arg1[%c0, %c0_0, %c0_1] : memref<1x32x32xf32, #tpu.memory_space<vmem>>, vector<1x32x32xf32>
    %c0_2 = arith.constant 0 : index
    %c0_3 = arith.constant 0 : index
    %c0_4 = arith.constant 0 : index
    %1 = vector.load %arg2[%c0_2, %c0_3, %c0_4] : memref<1x32x32xf32, #tpu.memory_space<vmem>>, vector<1x32x32xf32>
    %2 = tpu.iota {dimensions = array<i32: 1>} : vector<8x128xi32>
    %cst = arith.constant 0.000000e+00 : f32
    %3 = vector.broadcast %cst : f32 to vector<8x128xf32>
    %4 = tpu.iota {dimensions = array<i32: 0>} : vector<32x32xi32>
    %5 = tpu.iota {dimensions = array<i32: 1>} : vector<32x32xi32>
    %c0_i32 = arith.constant 0 : i32
    %6 = vector.broadcast %c0_i32 : i32 to vector<32x32xi32>
    %7 = arith.addi %4, %6 : vector<32x32xi32>
    %8 = arith.cmpi eq, %7, %5 : vector<32x32xi32>
    %9 = arith.extui %8 : vector<32x32xi1> to vector<32x32xi32>
    %10 = arith.sitofp %9 : vector<32x32xi32> to vector<32x32xf32>
    "tpu.trace_start"() <{level = 10 : i32, message = "bij,bjk->bik"}> : () -> ()
    %cst_5 = arith.constant dense<0.000000e+00> : vector<1x32x32xf32>
    %11 = tpu.matmul %0, %1, %cst_5 {dimension_numbers = #tpu.dot_dimension_numbers<[2], [1], [1], [2], [0, 0, 0, 1, 1, 2], [0], [0]>} : vector<1x32x32xf32>, vector<1x32x32xf32>, vector<1x32x32xf32> -> vector<1x32x32xf32>
    "tpu.trace_stop"() : () -> ()
    %12 = arith.mulf %11, %11 : vector<1x32x32xf32>
    %13 = vector.shape_cast %12 : vector<1x32x32xf32> to vector<1x1x32x32xf32>
    %cst_6 = arith.constant dense<0.000000e+00> : vector<1xf32>
    %14 = vector.multi_reduction <add>, %13, %cst_6 [1, 2, 3] : vector<1x1x32x32xf32> to vector<1xf32>
    %15 = vector.shape_cast %14 : vector<1xf32> to vector<1x1x1x1xf32>
    %16 = vector.extract %15[0, 0, 0, 0] : f32 from vector<1x1x1x1xf32>
    %17 = vector.shape_cast %10 : vector<32x32xf32> to vector<1x32x32xf32>
    %18 = arith.mulf %11, %17 : vector<1x32x32xf32>
    %19 = vector.shape_cast %18 : vector<1x32x32xf32> to vector<1x1x32x32xf32>
    %cst_7 = arith.constant dense<0.000000e+00> : vector<1xf32>
    %20 = vector.multi_reduction <add>, %19, %cst_7 [1, 2, 3] : vector<1x1x32x32xf32> to vector<1xf32>
    %21 = vector.shape_cast %20 : vector<1xf32> to vector<1x1x1x1xf32>
    %22 = vector.extract %21[0, 0, 0, 0] : f32 from vector<1x1x1x1xf32>
    %cst_8 = arith.constant 2.000000e+00 : f32
    %23 = arith.mulf %cst_8, %22 : f32
    %24 = arith.subf %16, %23 : f32
    "tpu.trace_start"() <{level = 10 : i32, message = "bij,bjk->bik"}> : () -> ()
    %cst_9 = arith.constant dense<0.000000e+00> : vector<1x32x32xf32>
    %25 = tpu.matmul %1, %0, %cst_9 {dimension_numbers = #tpu.dot_dimension_numbers<[2], [1], [1], [2], [0, 0, 0, 1, 1, 2], [0], [0]>} : vector<1x32x32xf32>, vector<1x32x32xf32>, vector<1x32x32xf32> -> vector<1x32x32xf32>
    "tpu.trace_stop"() : () -> ()
    %26 = arith.mulf %25, %25 : vector<1x32x32xf32>
    %27 = vector.shape_cast %26 : vector<1x32x32xf32> to vector<1x1x32x32xf32>
    %cst_10 = arith.constant dense<0.000000e+00> : vector<1xf32>
    %28 = vector.multi_reduction <add>, %27, %cst_10 [1, 2, 3] : vector<1x1x32x32xf32> to vector<1xf32>
    %29 = vector.shape_cast %28 : vector<1xf32> to vector<1x1x1x1xf32>
    %30 = vector.extract %29[0, 0, 0, 0] : f32 from vector<1x1x1x1xf32>
    %31 = arith.addf %24, %30 : f32
    %32 = vector.shape_cast %10 : vector<32x32xf32> to vector<1x32x32xf32>
    %33 = arith.mulf %25, %32 : vector<1x32x32xf32>
    %34 = vector.shape_cast %33 : vector<1x32x32xf32> to vector<1x1x32x32xf32>
    %cst_11 = arith.constant dense<0.000000e+00> : vector<1xf32>
    %35 = vector.multi_reduction <add>, %34, %cst_11 [1, 2, 3] : vector<1x1x32x32xf32> to vector<1xf32>
    %36 = vector.shape_cast %35 : vector<1xf32> to vector<1x1x1x1xf32>
    %37 = vector.extract %36[0, 0, 0, 0] : f32 from vector<1x1x1x1xf32>
    %cst_12 = arith.constant 2.000000e+00 : f32
    %38 = arith.mulf %cst_12, %37 : f32
    %39 = arith.subf %31, %38 : f32
    %cst_13 = arith.constant 6.400000e+01 : f32
    %40 = arith.addf %39, %cst_13 : f32
    %c0_i32_14 = arith.constant 0 : i32
    %41 = vector.broadcast %c0_i32_14 : i32 to vector<8x128xi32>
    %42 = arith.cmpi eq, %2, %41 : vector<8x128xi32>
    %cst_15 = arith.constant 0.000000e+00 : f32
    %43 = vector.broadcast %40 : f32 to vector<8x128xf32>
    %44 = vector.broadcast %cst_15 : f32 to vector<8x128xf32>
    %45 = arith.select %42, %43, %44 : vector<8x128xi1>, vector<8x128xf32>
    %46 = arith.addf %3, %45 : vector<8x128xf32>
    "tpu.trace_start"() <{level = 10 : i32, message = "bij,bik->bjk"}> : () -> ()
    %cst_16 = arith.constant dense<0.000000e+00> : vector<1x32x32xf32>
    %47 = tpu.matmul %0, %0, %cst_16 {dimension_numbers = #tpu.dot_dimension_numbers<[1], [1], [2], [2], [0, 0, 0, 2, 1, 2], [0], [0]>} : vector<1x32x32xf32>, vector<1x32x32xf32>, vector<1x32x32xf32> -> vector<1x32x32xf32>
    "tpu.trace_stop"() : () -> ()
    %48 = arith.mulf %47, %47 : vector<1x32x32xf32>
    %49 = vector.shape_cast %48 : vector<1x32x32xf32> to vector<1x1x32x32xf32>
    %cst_17 = arith.constant dense<0.000000e+00> : vector<1xf32>
    %50 = vector.multi_reduction <add>, %49, %cst_17 [1, 2, 3] : vector<1x1x32x32xf32> to vector<1xf32>
    %51 = vector.shape_cast %50 : vector<1xf32> to vector<1x1x1x1xf32>
    %52 = vector.extract %51[0, 0, 0, 0] : f32 from vector<1x1x1x1xf32>
    %53 = arith.mulf %0, %0 : vector<1x32x32xf32>
    %54 = vector.shape_cast %53 : vector<1x32x32xf32> to vector<1x1x32x32xf32>
    %cst_18 = arith.constant dense<0.000000e+00> : vector<1xf32>
    %55 = vector.multi_reduction <add>, %54, %cst_18 [1, 2, 3] : vector<1x1x32x32xf32> to vector<1xf32>
    %56 = vector.shape_cast %55 : vector<1xf32> to vector<1x1x1x1xf32>
    %57 = vector.extract %56[0, 0, 0, 0] : f32 from vector<1x1x1x1xf32>
    %cst_19 = arith.constant 2.000000e+00 : f32
    %58 = arith.mulf %cst_19, %57 : f32
    %59 = arith.subf %52, %58 : f32
    "tpu.trace_start"() <{level = 10 : i32, message = "bij,bik->bjk"}> : () -> ()
    %cst_20 = arith.constant dense<0.000000e+00> : vector<1x32x32xf32>
    %60 = tpu.matmul %1, %1, %cst_20 {dimension_numbers = #tpu.dot_dimension_numbers<[1], [1], [2], [2], [0, 0, 0, 2, 1, 2], [0], [0]>} : vector<1x32x32xf32>, vector<1x32x32xf32>, vector<1x32x32xf32> -> vector<1x32x32xf32>
    "tpu.trace_stop"() : () -> ()
    %61 = arith.mulf %60, %60 : vector<1x32x32xf32>
    %62 = vector.shape_cast %61 : vector<1x32x32xf32> to vector<1x1x32x32xf32>
    %cst_21 = arith.constant dense<0.000000e+00> : vector<1xf32>
    %63 = vector.multi_reduction <add>, %62, %cst_21 [1, 2, 3] : vector<1x1x32x32xf32> to vector<1xf32>
    %64 = vector.shape_cast %63 : vector<1xf32> to vector<1x1x1x1xf32>
    %65 = vector.extract %64[0, 0, 0, 0] : f32 from vector<1x1x1x1xf32>
    %66 = arith.addf %59, %65 : f32
    %67 = arith.mulf %1, %1 : vector<1x32x32xf32>
    %68 = vector.shape_cast %67 : vector<1x32x32xf32> to vector<1x1x32x32xf32>
    %cst_22 = arith.constant dense<0.000000e+00> : vector<1xf32>
    %69 = vector.multi_reduction <add>, %68, %cst_22 [1, 2, 3] : vector<1x1x32x32xf32> to vector<1xf32>
    %70 = vector.shape_cast %69 : vector<1xf32> to vector<1x1x1x1xf32>
    %71 = vector.extract %70[0, 0, 0, 0] : f32 from vector<1x1x1x1xf32>
    %cst_23 = arith.constant 2.000000e+00 : f32
    %72 = arith.mulf %cst_23, %71 : f32
    %73 = arith.subf %66, %72 : f32
    %cst_24 = arith.constant 6.400000e+01 : f32
    %74 = arith.addf %73, %cst_24 : f32
    %c1_i32 = arith.constant 1 : i32
    %75 = vector.broadcast %c1_i32 : i32 to vector<8x128xi32>
    %76 = arith.cmpi eq, %2, %75 : vector<8x128xi32>
    %cst_25 = arith.constant 0.000000e+00 : f32
    %77 = vector.broadcast %74 : f32 to vector<8x128xf32>
    %78 = vector.broadcast %cst_25 : f32 to vector<8x128xf32>
    %79 = arith.select %76, %77, %78 : vector<8x128xi1>, vector<8x128xf32>
    %80 = arith.addf %46, %79 : vector<8x128xf32>
    %c0_26 = arith.constant 0 : index
    %c0_27 = arith.constant 0 : index
    %c0_28 = arith.constant 0 : index
    %81 = vector.load %arg3[%c0_26, %c0_27, %c0_28] : memref<1x1x32xf32, #tpu.memory_space<vmem>>, vector<1x1x32xf32>
    %c0_29 = arith.constant 0 : index
    %c0_30 = arith.constant 0 : index
    %c0_31 = arith.constant 0 : index
    %82 = vector.load %arg4[%c0_29, %c0_30, %c0_31] : memref<1x1x32xf32, #tpu.memory_space<vmem>>, vector<1x1x32xf32>
    %83 = vector.shape_cast %81 : vector<1x1x32xf32> to vector<1x1x32xf32>
    %84 = vector.broadcast %83 : vector<1x1x32xf32> to vector<1x32x32xf32>
    %85 = tpu.transpose %84, [0, 2, 1] : vector<1x32x32xf32> -> vector<1x32x32xf32>
    %86 = vector.shape_cast %82 : vector<1x1x32xf32> to vector<1x1x32xf32>
    %87 = vector.broadcast %86 : vector<1x1x32xf32> to vector<1x32x32xf32>
    %88 = tpu.transpose %87, [0, 2, 1] : vector<1x32x32xf32> -> vector<1x32x32xf32>
    %89 = vector.broadcast %81 : vector<1x1x32xf32> to vector<1x32x32xf32>
    %90 = arith.mulf %0, %89 : vector<1x32x32xf32>
    %91 = arith.mulf %88, %0 : vector<1x32x32xf32>
    %92 = arith.subf %90, %91 : vector<1x32x32xf32>
    %93 = arith.mulf %92, %92 : vector<1x32x32xf32>
    %94 = vector.shape_cast %93 : vector<1x32x32xf32> to vector<1x1x32x32xf32>
    %cst_32 = arith.constant dense<0.000000e+00> : vector<1xf32>
    %95 = vector.multi_reduction <add>, %94, %cst_32 [1, 2, 3] : vector<1x1x32x32xf32> to vector<1xf32>
    %96 = vector.shape_cast %95 : vector<1xf32> to vector<1x1x1x1xf32>
    %97 = vector.extract %96[0, 0, 0, 0] : f32 from vector<1x1x1x1xf32>
    %98 = vector.broadcast %82 : vector<1x1x32xf32> to vector<1x32x32xf32>
    %99 = arith.mulf %1, %98 : vector<1x32x32xf32>
    %100 = arith.mulf %85, %1 : vector<1x32x32xf32>
    %101 = arith.subf %99, %100 : vector<1x32x32xf32>
    %102 = arith.mulf %101, %101 : vector<1x32x32xf32>
    %103 = vector.shape_cast %102 : vector<1x32x32xf32> to vector<1x1x32x32xf32>
    %cst_33 = arith.constant dense<0.000000e+00> : vector<1xf32>
    %104 = vector.multi_reduction <add>, %103, %cst_33 [1, 2, 3] : vector<1x1x32x32xf32> to vector<1xf32>
    %105 = vector.shape_cast %104 : vector<1xf32> to vector<1x1x1x1xf32>
    %106 = vector.extract %105[0, 0, 0, 0] : f32 from vector<1x1x1x1xf32>
    %107 = arith.addf %97, %106 : f32
    %c2_i32 = arith.constant 2 : i32
    %108 = vector.broadcast %c2_i32 : i32 to vector<8x128xi32>
    %109 = arith.cmpi eq, %2, %108 : vector<8x128xi32>
    %cst_34 = arith.constant 0.000000e+00 : f32
    %110 = vector.broadcast %107 : f32 to vector<8x128xf32>
    %111 = vector.broadcast %cst_34 : f32 to vector<8x128xf32>
    %112 = arith.select %109, %110, %111 : vector<8x128xi1>, vector<8x128xf32>
    %113 = arith.addf %80, %112 : vector<8x128xf32>
    %c0_35 = arith.constant 0 : index
    %c0_36 = arith.constant 0 : index
    %c0_37 = arith.constant 0 : index
    %114 = vector.load %arg5[%c0_35, %c0_36, %c0_37] : memref<1x8x128xf32, #tpu.memory_space<vmem>>, vector<1x8x128xf32>
    %115 = vector.shape_cast %114 : vector<1x8x128xf32> to vector<8x128xf32>
    %116 = vector.shape_cast %113 : vector<8x128xf32> to vector<1x8x128xf32>
    tpu.vector_store %arg5[%c0_35, %c0_36, %c0_37], %116 {strides = array<i32>} : memref<1x8x128xf32, #tpu.memory_space<vmem>>, vector<1x8x128xf32>,
    return
  }
  func.func @transform_0(%arg0: i32) -> (i32, i32, i32) {
    %c0_i32 = arith.constant 0 : i32
    %c0_i32_0 = arith.constant 0 : i32
    %c0_i32_1 = arith.constant 0 : i32
    return %arg0, %c0_i32, %c0_i32_0 : i32, i32, i32
  }
  func.func @transform_1(%arg0: i32) -> (i32, i32, i32) {
    %c0_i32 = arith.constant 0 : i32
    %c0_i32_0 = arith.constant 0 : i32
    %c0_i32_1 = arith.constant 0 : i32
    return %arg0, %c0_i32, %c0_i32_0 : i32, i32, i32
  }
  func.func @transform_2(%arg0: i32) -> (i32, i32, i32) {
    %c0_i32 = arith.constant 0 : i32
    %c0_i32_0 = arith.constant 0 : i32
    %c0_i32_1 = arith.constant 0 : i32
    return %arg0, %c0_i32, %c0_i32_0 : i32, i32, i32
  }
  func.func @transform_3(%arg0: i32) -> (i32, i32, i32) {
    %c0_i32 = arith.constant 0 : i32
    %c0_i32_0 = arith.constant 0 : i32
    %c0_i32_1 = arith.constant 0 : i32
    return %arg0, %c0_i32, %c0_i32_0 : i32, i32, i32
  }
  func.func @transform_4(%arg0: i32) -> (i32, i32, i32) {
    %c0_i32 = arith.constant 0 : i32
    %c0_i32_0 = arith.constant 0 : i32
    %c0_i32_1 = arith.constant 0 : i32
    return %arg0, %c0_i32, %c0_i32_0 : i32, i32, i32
  }
}

</mosaic_0001>

<bundles_post_ra>
// kernel: tpu_custom_call.1
= control target key start
LH: loop header
LB: loop body
LE: loop exit
PB: predicated region body
PF: predicated region fallthrough
CT: control target
= control target key end

     0   :  { %s2002_s0 = inlined_call_operand.hbm [shape: f32[2,32,32], index: 0, kind: input, shape index: {}]   ;;  %s2003_s1 = inlined_call_operand.hbm [shape: f32[2,32,32], index: 1, kind: input, shape index: {}]   ;;  %s2004_s2 = inlined_call_operand.vmem [shape: f32[2,1,32], index: 2, kind: input, shape index: {}]   ;;  %s2005_s3 = inlined_call_operand.vmem [shape: f32[2,1,32], index: 3, kind: input, shape index: {}]   ;;  %s2006_s4 = inlined_call_operand.hbm [shape: f32[2,8,128], index: 4, kind: output, shape index: {}]  }
   0x1   :  { %2009 = sst [smem:[#allocation12_spill]] %s2002_s0 }
   0x2   :  { %2010 = sst [smem:[#allocation13_spill]] %s2003_s1 }
   0x3   :  { %2011 = sst [smem:[#allocation14_spill]] %s2004_s2 }
   0x4   :  { %2012 = sst [smem:[#allocation15_spill]] %s2005_s3 }
   0x5   :  { %9 = vsyncpa [#allocation3], 0 }
   0x6   :  { %11 = vsyncpa [#allocation3 + $0x1], 0 }
   0x7   :  { %12 = vsyncpa [#allocation6], 0 }
   0x8   :  { %14 = vsyncpa [#allocation6 + $0x1], 0 }
   0x9   :  { %15 = vsyncpa [#allocation4], 0 }
   0xa   :  { %17 = vsyncpa [#allocation4 + $0x1], 0  ;;  %s1615_s15 = smov 0   ;;  %s1617_s16 = smov 0  }
   0xb   :  { %s1619_s17 = smov 0   ;;  %s1621_s18 = smov 0  }
   0xc LB: > { %s1636_s19 = sadd.s32 4294967295, %s1582_s18   ;;  %s1217_s20 = sadd.s32 4294967294, %s1582_s18   ;;  %s1582_s18 = sphi %s1621_s18, %s2032_s18   ;;  %s1578_s17 = sphi %s1619_s17, %s2031_s17   ;;  %s1574_s16 = sphi %s1617_s16, %s2030_s16   ;;  %s1570_s15 = sphi %s1615_s15, %s2029_s15  }
   0xd   : > { %s1640_s21 = sadd.s32 1, %s1582_s18   ;;  %s30_s22 = sadd.s32 1, %s1578_s17 }
   0xe   : > { %s27_s23 = ssub.s32 %s1582_s18, %s1640_s21  ;;  %p37_p0 = scmp.ne.s32.totalorder %s1578_s17, %s1574_s16 }
   0xf   : > { %p28_p1 = scmp.eq.s32.totalorder %s27_s23, 0  ;;  %p38_p2 = scmp.eq.s32.totalorder %s1582_s18, 0 }
  0x10   : > { %p43_p3 = scmp.ne.s32.totalorder %s1574_s16, %s1570_s15  ;;  %p44_p4 = scmp.eq.s32.totalorder %s1636_s19, 0 }
  0x11   : > { %s1652_s24 = scalar_select %p28_p1, %s1578_s17, %s30_s22  }
  0x12   : > { %p1654_p5 = por %p38_p2, %p37_p0  ;;  %p1658_p6 = por %p44_p4, %p43_p3 }
  0x13   : > { %2013 = sst [smem:[#allocation11_spill]] %s1652_s24  ;;  %p145_p7 = scmp.eq.s32.totalorder %s1636_s19, 1 }
  0x14   : > { %s2015_s26 = scalar_select %p1658_p6, 1, 0 }
  0x15   : > { %p151_p8 = scmp.eq.s32.totalorder %s1217_s20, 1  ;;  %p1415_p10 = scmp.lt.s32.totalorder %s1582_s18, 2 }
  0x16   : > { %p1665_p11 = por %p145_p7, %p37_p0  ;;  %s1674_s29 = sand.u32 1, %s1578_s17  }
  0x17   : > { %p1669_p12 = por %p151_p8, %p43_p3  ;;  %s1256_s30 = sshll.u32 %s1582_s18, 9 }
  0x18   : > { %s2016_s27 = scalar_select %p1665_p11, 1, 0 }
  0x19   : > { %s2017_s28 = scalar_select %p1669_p12, 1, 0 }
  0x1a   : > { %s1220_s5 = sshll.u32 %s1674_s29, 5  ;;  %s2018_s0 = sld [smem:[#allocation12_spill]] }
  0x1b   : > { %s175_s9 = scalar_lea.vmem [#allocation2], %s1220_s5  ;;  %p1689_p13 = pnand %p1415_p10, %p1654_p5 }
  0x1c   : > { %s182_s10 = sshll.u32 %s175_s9, 4  ;;  %s172_s12 = scalar_lea.sflag [#allocation3], %s1674_s29  ;;  %s1693_s10 = int_to_ptr.vmem [resolvable:$true] %s182_s10 }
  0x1d   : > { %p1454_p1 = pneg %p1689_p13 }
  0x20   : > { %s1683_s8 = scalar_lea.hbm %s2018_s0, %s1256_s30  ;;  %s1457_s22 = scalar_lea.hbm %s2018_s0, 1024 }
  0x21   : > { %s1452_s13 = scalar_lea.hbm %s1683_s8, 512  ;;  %p1458_p4 = scmp.lt.u32.totalorder %s1683_s8, %s2018_s0 }
  0x22   : > { %p1453_p0 = scmp.ne.s32.totalorder %s1683_s8, %s1452_s13  ;;  %p1459_p5 = scmp.lt.u32.totalorder %s1457_s22, %s1452_s13 }
  0x23   : > { %p1461_p8 = scmp.lt.u32.totalorder %s1452_s13, %s1683_s8 }
  0x24   : > { %p1455_p2 = pnand %p1454_p1, %p1453_p0  ;;  %p1460_p7 = por %p1459_p5, %p1458_p4 }
  0x26   : > { %p1456_p3 = pneg %p1455_p2  ;;  %p1462_p10 = por %p1461_p8, %p1460_p7 }
  0x28   : > { %p1463_p9 = pnand %p1462_p10, %p1456_p3 }
  0x2a   : > { %1466 = shalt.err (!%p1463_p9)
}
  0x2b   : > { %s1467_s6 = scalar_lea.vmem %s1693_s10, 512  ;;  %s1584_s7 = smov [#allocation2]  }
  0x2c   : > { %p1468_p0 = scmp.ne.s32.totalorder %s1693_s10, %s1467_s6  ;;  %s1472_s9 = sshll.u32 %s1584_s7, 4  ;;  %s1473_s9 = int_to_ptr.vmem [resolvable:$false] %s1472_s9 }
  0x2d   : > { %s1474_s14 = scalar_lea.vmem %s1473_s9, 1024  ;;  %p1475_p11 = scmp.lt.s32.totalorder %s1693_s10, %s1473_s9 }
  0x2e   : > { %p1470_p2 = pnand %p1468_p0, %p1454_p1  ;;  %p1476_p4 = scmp.lt.s32.totalorder %s1474_s14, %s1467_s6 }
  0x30   : > { %p1471_p12 = pneg %p1470_p2  ;;  %p1477_p5 = por %p1476_p4, %p1475_p11 }
  0x32   : > { %p1478_p7 = pnand %p1477_p5, %p1471_p12 }
  0x34   : > { %1481 = shalt.err (!%p1478_p7)
}
  0x35   : > { %s1585_s13 = smov 128   ;;  %s1586_s20 = smov 8  }
  0x36   : > { %1407 = dma.hbm_to_vmem [thread:$0]  (!%p1689_p13), %s1683_s8, 512, %s1693_s10, %s172_s12, %s1585_s13, %s1585_s13, %s1586_s20  }
  0x37   : > { %p1226_p9 = scmp.ge.s32.totalorder %s1582_s18, 1  ;;  %p223_p11 = scmp.lt.s32.totalorder %s1582_s18, 3 }
  0x38   : > { %s2021_s1 = sld [smem:[#allocation13_spill]]  ;;  %s196_s7 = scalar_lea.vmem [#allocation5], %s1220_s5 }
  0x39   : > { %p1728_p12 = pnand %p1226_p9, %p223_p11  ;;  %s203_s9 = sshll.u32 %s196_s7, 4  ;;  %s1741_s9 = int_to_ptr.vmem [resolvable:$true] %s203_s9 }
  0x3a   : > { %s193_s8 = scalar_lea.sflag [#allocation6], %s1674_s29 }
  0x3e   : > { %s1737_s6 = scalar_lea.hbm %s2021_s1, %s1256_s30  ;;  %s1487_s30 = scalar_lea.hbm %s2021_s1, 1024 }
  0x3f   : > { %s1482_s10 = scalar_lea.hbm %s1737_s6, 512  ;;  %p1488_p0 = scmp.lt.u32.totalorder %s1737_s6, %s2021_s1 }
  0x40   : > { %p1483_p3 = scmp.ne.s32.totalorder %s1737_s6, %s1482_s10  ;;  %p1489_p2 = scmp.lt.u32.totalorder %s1487_s30, %s1482_s10 }
  0x41   : > { %p1491_p5 = scmp.lt.u32.totalorder %s1482_s10, %s1737_s6 }
  0x42   : > { %p1485_p8 = pnand %p1483_p3, %p1454_p1  ;;  %p1490_p4 = por %p1489_p2, %p1488_p0 }
  0x44   : > { %p1486_p10 = pneg %p1485_p8  ;;  %p1492_p7 = por %p1491_p5, %p1490_p4 }
  0x46   : > { %p1493_p9 = pnand %p1492_p7, %p1486_p10 }
  0x48   : > { %1496 = shalt.err (!%p1493_p9)
}
  0x49   : > { %s1497_s5 = scalar_lea.vmem %s1741_s9, 512  ;;  %s1587_s7 = smov [#allocation5]  }
  0x4a   : > { %p1498_p11 = scmp.ne.s32.totalorder %s1741_s9, %s1497_s5  ;;  %s1502_s12 = sshll.u32 %s1587_s7, 4  ;;  %s1503_s12 = int_to_ptr.vmem [resolvable:$false] %s1502_s12 }
  0x4b   : > { %s1504_s14 = scalar_lea.vmem %s1503_s12, 1024  ;;  %p1505_p6 = scmp.lt.s32.totalorder %s1741_s9, %s1503_s12 }
  0x4c   : > { %p1500_p3 = pnand %p1498_p11, %p1454_p1  ;;  %p1506_p0 = scmp.lt.s32.totalorder %s1504_s14, %s1497_s5 }
  0x4e   : > { %p1501_p8 = pneg %p1500_p3  ;;  %p1507_p2 = por %p1506_p0, %p1505_p6 }
  0x50   : > { %p1508_p4 = pnand %p1507_p2, %p1501_p8 }
  0x52   : > { %1511 = shalt.err (!%p1508_p4)
}
  0x53   : > { %1410 = dma.hbm_to_vmem [thread:$0]  (!%p1689_p13), %s1737_s6, 512, %s1741_s9, %s193_s8, %s1585_s13, %s1585_s13, %s1586_s20  }
  0x54   : > { %227 = sbr.rel (%p1728_p12) target bundleno = 694 (0x2b6), region = 36  ;;  %s1775_s10 = sand.u32 (!%p1728_p12), 1, %s1574_s16  }
  0x55   : > { %s1227_s30 = sshll.u32 (!%p1728_p12), %s1775_s10, 5  ;;  %s230_s23 = scalar_lea.sflag (!%p1728_p12), [#allocation3], %s1775_s10 }
  0x56   : > { %s233_s11 = scalar_lea.vmem (!%p1728_p12), [#allocation2], %s1227_s30  ;;  %p2022_p6 = scmp.ne.s32.totalorder (!%p1728_p12), %s2015_s26, 0 }
  0x5b   : > { %1557 = dma.done.wait (%p2022_p6), %s230_s23, 512  }
  0x5c   : > { %1559 = vsyncadd (%p2022_p6), %s230_s23, 4294966784  ;;  %s239_s29 = scalar_lea.sflag [#allocation6], %s1775_s10  ;;  %s242_s13 = scalar_lea.vmem [#allocation5], %s1227_s30 }
  0x5d   : > { %1561 = dma.done.wait (%p2022_p6), %s239_s29, 512  }
  0x5e   : > { %1563 = vsyncadd (%p2022_p6), %s239_s29, 4294966784  ;;  %vm311_vm0 = vcmask 261120   ;;  %v1788_v0 = vld [vmem:[%s242_s13] sm:$0xff]  ;;  %v1792_v2 = vld [vmem:[%s242_s13 + $0x8] sm:$0xff]  ;;  %p278_p13 = scmp.lt.s32.totalorder %s1636_s19, 1  ;;  %s2023_s2 = sld [smem:[#allocation14_spill]]  ;;  %v292_v33 = vlaneseq }
  0x5f   : > { %v1790_v1 = vld [vmem:[%s233_s11] sm:$0xff]  ;;  %767 = vxpose.xlu1.b32.start [1/4] (short) (narrow) %v1788_v0, 32  ;;  %v1796_v3 = vld [vmem:[%s233_s11 + $0x8] sm:$0xff]  ;;  %v1798_v4 = vld [vmem:[%s242_s13 + $0x10] sm:$0xff]  ;;  %v1346_v5 = vpack.c.bf16 %v1792_v2, %v1788_v0  ;;  %1312 = vmatprep.mubr.msk.f32.mxu1 %vm311_vm0, %v1788_v0  ;;  %s2024_s3 = sld [smem:[#allocation15_spill]]  ;;  %v1588_v50 = vmov 0.0   ;;  %v917_v52 = vmul.f32 %v1788_v0, %v1788_v0  ;;  %v918_v54 = vmul.f32 %v1792_v2, %v1792_v2 }
  0x60   : > { %596 = vxpose.xlu0.b32.start [1/4] (short) (narrow) %v1790_v1, 32  ;;  %v1802_v6 = vld [vmem:[%s233_s11 + $0x10] sm:$0xff]  ;;  %v1804_v7 = vld [vmem:[%s242_s13 + $0x18] sm:$0xff]  ;;  %v1354_v9 = vpack.c.bf16 %v1796_v3, %v1790_v1  ;;  %1298 = vmatprep.mubr.msk.f32.mxu0 %vm311_vm0, %v1790_v1  ;;  %s279_s26 = scalar_select %p278_p13, %s1636_s19, 1  ;;  %v745_v14 = vmul.f32 %v1790_v1, %v1790_v1  ;;  %v746_v15 = vmul.f32 %v1796_v3, %v1796_v3  ;;  %v295_v35 = vshrl.u32 %v292_v33, 7 }
  0x61   : > { %v1806_v8 = vld [vmem:[%s233_s11 + $0x18] sm:$0xff]  ;;  %1347 = vmatprep.subr.bf16.mxu0 %v1346_v5  ;;  %v1350_v10 = vpack.c.bf16 %v1804_v7, %v1798_v4  ;;  %v747_v16 = vmul.f32 %v1802_v6, %v1802_v6  ;;  %v1876_v37 = vand.u32 127, %v292_v33  ;;  %p2025_p12 = scmp.ne.s32.totalorder %s2016_s27, 0 }
  0x62   : > { %v1358_v11 = vpack.c.bf16 %v1806_v8, %v1802_v6  ;;  %1349 = vmatpush3.bf16.msra.mxu0 %v1346_v5  ;;  %1355 = vmatprep.subr.bf16.mxu1 %v1354_v9  ;;  %v748_v17 = vmul.f32 %v1806_v8, %v1806_v8  ;;  %v749_v18 = vsel %vm311_vm0, %v745_v14, 0.0  ;;  %v750_v19 = vsel %vm311_vm0, %v746_v15, 0.0 }
  0x63   : > { %768 = vxpose.xlu1.b32.cont [2/4] (short) (narrow) %v1792_v2, 32  ;;  %1351 = vmatprep.subr.bf16.mxu0 %v1350_v10  ;;  %v752_v20 = vsel %vm311_vm0, %v747_v16, 0.0  ;;  %v751_v21 = vadd.f32 %v750_v19, %v749_v18  ;;  %v296_v38 = vadd.s32 8, %v295_v35  ;;  %v298_v39 = vadd.s32 24, %v295_v35 }
  0x64   : > { %597 = vxpose.xlu0.b32.cont [2/4] (short) (narrow) %v1796_v3, 32  ;;  %1357 = vmatpush3.bf16.msra.mxu1 %v1354_v9  ;;  %s280_s6 = scalar_lea.vmem %s2023_s2, %s279_s26  ;;  %v754_v22 = vsel %vm311_vm0, %v748_v17, 0.0  ;;  %v297_v42 = vadd.s32 16, %v295_v35  ;;  %vm299_vm2 = vcmp.eq.s32.totalorder %v295_v35, %v1876_v37  ;;  %v922_v17 = vsel %vm311_vm0, %v918_v54, 0.0  ;;  %s1229_s2 = sshll.u32 %s1775_s10, 3 }
  0x65   : > { %1359 = vmatprep.subr.bf16.mxu1 %v1358_v11  ;;  %s283_s25 = scalar_lea.vmem %s2024_s3, %s279_s26  ;;  %v1844_v12 = vld [vmem:[%s280_s6] ss:$0 sm:$0xff]  ;;  %v753_v23 = vadd.f32 %v752_v20, %v751_v21  ;;  %vm300_vm1 = vcmp.eq.s32.totalorder %v296_v38, %v1876_v37  ;;  %vm302_vm3 = vcmp.eq.s32.totalorder %v298_v39, %v1876_v37  ;;  %v1230_v53 = vsel %vm299_vm2, 1.0, %v1588_v50 }
  0x66   : > { %1353 = vmatpush3.bf16.msra.mxu0 %v1350_v10  ;;  %v1846_v13 = vld [vmem:[%s283_s25] ss:$0 sm:$0xff]  ;;  %vm301_vm4 = vcmp.eq.s32.totalorder %v297_v42, %v1876_v37  ;;  %v1231_v51 = vsel %vm300_vm1, 1.0, %v1588_v50  ;;  %v1233_v56 = vsel %vm302_vm3, 1.0, %v1588_v50  ;;  %vm592_vm5 = vcmp.eq.s32.totalorder %v1876_v37, 0 }
  0x67   : > { %769 = vxpose.xlu1.b32.cont [3/4] (short) (narrow) %v1798_v4, 32  ;;  %1363 = vmatprep.subr.bf16.mxu0 %v1354_v9  ;;  %v755_v24 = vadd.f32 %v754_v22, %v753_v23  ;;  %v1054_v40 = vmul.f32 %v1846_v13, %v1788_v0  ;;  %v1055_v43 = vmul.f32 %v1846_v13, %v1792_v2  ;;  %v1232_v57 = vsel %vm301_vm4, 1.0, %v1588_v50 }
  0x68   : > { %598 = vxpose.xlu0.b32.cont [3/4] (short) (narrow) %v1802_v6, 32  ;;  %1361 = vmatpush3.bf16.msra.mxu1 %v1358_v11  ;;  %v1056_v48 = vmul.f32 %v1846_v13, %v1798_v4  ;;  %v1057_v16 = vmul.f32 %v1846_v13, %v1804_v7  ;;  %vm940_vm6 = vcmp.eq.s32.totalorder %v1876_v37, 1  ;;  %vm1087_vm7 = vcmp.eq.s32.totalorder %v1876_v37, 2 }
  0x69   : > { %1299 = vmatmul.mubr.msk.f32.vlgmr.msra.gmra.mrb[0].mxu0 %vm311_vm0, %v1796_v3  ;;  %1371 = vmatprep.subr.bf16.mxu1 %v1346_v5 }
  0x6a   : > { %1301 = vmatprep.mubr.msk.f32.mxu0 %vm311_vm0, %v1802_v6  ;;  %1365 = vmatpush3.bf16.msra.mxu0 %v1354_v9 }
  0x6b   : > { %770 = vxpose.xlu1.b32.end [4/4] (short) (narrow) %v1804_v7, 32  ;;  %1313 = vmatmul.mubr.msk.f32.vlgmr.msra.gmra.mrb[0].mxu1 %vm311_vm0, %v1792_v2 }
  0x6c   : > { %599 = vxpose.xlu0.b32.end [4/4] (short) (narrow) %v1806_v8, 32  ;;  %1367 = vmatprep.subr.bf16.mxu0 %v1358_v11 }
  0x6d   : > { %1302 = vmatmul.mubr.msk.f32.gmra.mrb[2].mxu0 %vm311_vm0, %v1806_v8  ;;  %1315 = vmatprep.mubr.msk.f32.mxu1 %vm311_vm0, %v1798_v4 }
  0x6e   : > { %1373 = vmatpush3.bf16.msra.mxu1 %v1346_v5  ;;  %1369 = vmatpush3.bf16.msra.mxu0 %v1358_v11  ;;  %v919_v11 = vmul.f32 %v1798_v4, %v1798_v4 }
  0x6f   : > { %1375 = vmatprep.subr.bf16.mxu1 %v1350_v10  ;;  %1316 = vmatmul.mubr.msk.f32.gmra.mrb[2].mxu1 %vm311_vm0, %v1804_v7 }
  0x70   : > { %952 = vxpose.xlu0.b32.start [1/4] (short) (narrow) %v1844_v12, 32  ;;  %990 = vxpose.xlu1.b32.start [1/4] (short) (narrow) %v1846_v13, 32 }
  0x72   : > { %1377 = vmatpush3.bf16.msra.mxu1 %v1350_v10 }
  0x74   : > { %953 = vxpose.xlu0.b32.cont [2/4] (short) (narrow) %v1844_v12, 32  ;;  %991 = vxpose.xlu1.b32.cont [2/4] (short) (narrow) %v1846_v13, 32 }
  0x78   : > { %954 = vxpose.xlu0.b32.cont [3/4] (short) (narrow) %v1844_v12, 32  ;;  %992 = vxpose.xlu1.b32.cont [3/4] (short) (narrow) %v1846_v13, 32 }
  0x7c   : > { %955 = vxpose.xlu0.b32.end [4/4] (short) (narrow) %v1844_v12, 32  ;;  %993 = vxpose.xlu1.b32.end [4/4] (short) (narrow) %v1846_v13, 32 }
  0xa3   : > { %756 = vadd.xlane.f32.xlu1 %v755_v24 }
  0xdf   : > { %v783_v25 = vpop.trf.xlu1 }
  0xe0   : > { %v612_v26 = vpop.trf.xlu0  ;;  %1340 = vmatprep.mubr.msk.f32.mxu1 %vm311_vm0, %v783_v25 }
  0xe1   : > { %1326 = vmatprep.mubr.msk.f32.mxu0 %vm311_vm0, %v612_v26 }
  0xe3   : > { %v784_v27 = vpop.trf.xlu1 }
  0xe4   : > { %v613_v28 = vpop.trf.xlu0  ;;  %1341 = vmatmul.mubr.msk.f32.vlgmr.msra.gmra.mrb[4].mxu1 %vm311_vm0, %v784_v27 }
  0xe5   : > { %1327 = vmatmul.mubr.msk.f32.vlgmr.msra.gmra.mrb[4].mxu0 %vm311_vm0, %v613_v28 }
  0xe7   : > { %v785_v29 = vpop.trf.xlu1 }
  0xe8   : > { %v614_v30 = vpop.trf.xlu0  ;;  %1343 = vmatprep.mubr.msk.f32.mxu1 %vm311_vm0, %v785_v29 }
  0xe9   : > { %1329 = vmatprep.mubr.msk.f32.mxu0 %vm311_vm0, %v614_v30 }
  0xeb   : > { %v786_v31 = vpop.trf.xlu1 }
  0xec   : > { %v615_v32 = vpop.trf.xlu0  ;;  %1344 = vmatmul.mubr.msk.f32.gmra.mrb[6].mxu1 %vm311_vm0, %v786_v31 }
  0xed   : > { %1330 = vmatmul.mubr.msk.f32.gmra.mrb[6].mxu0 %vm311_vm0, %v615_v32 }
  0xf0   : > { %v968_v34 = vpop.trf.xlu0 }
  0xf1   : > { %v1058_v41 = vmul.f32 %v968_v34, %v1788_v0  ;;  %v921_v0 = vsel %vm311_vm0, %v917_v52, 0.0 }
  0xf3   : > { %v1062_v45 = vsub.f32 %v1054_v40, %v1058_v41 }
  0xf4   : > { %v969_v36 = vpop.trf.xlu0 }
  0xf5   : > { %v1059_v44 = vmul.f32 %v969_v36, %v1792_v2  ;;  %v1066_v58 = vmul.f32 %v1062_v45, %v1062_v45 }
  0xf7   : > { %v1063_v47 = vsub.f32 %v1055_v43, %v1059_v44 }
  0xf8   : > { %v970_v46 = vpop.trf.xlu0 }
  0xf9   : > { %v1060_v49 = vmul.f32 %v970_v46, %v1798_v4  ;;  %v1067_v62 = vmul.f32 %v1063_v47, %v1063_v47 }
  0xfb   : > { %v1064_v63 = vsub.f32 %v1056_v48, %v1060_v49 }
  0xfc   : > { %v971_v10 = vpop.trf.xlu0 }
  0xfd   : > { %v1061_v27 = vmul.f32 %v971_v10, %v1804_v7  ;;  %v923_v10 = vadd.f32 %v922_v17, %v921_v0 }
 0x13c   : > { %v1300_v55 = vpop.f32.mrb[0].mxu0 }
 0x13d   : > { %v410_v59 = vmul.f32 %v1300_v55, %v1300_v55  ;;  %v430_v60 = vmul.f32 %v1300_v55, %v1231_v51  ;;  %v390_v61 = vpop.f32.mrb[1].mxu0 }
 0x13e   : > { %v409_v5 = vmul.f32 %v390_v61, %v390_v61  ;;  %v429_v9 = vmul.f32 %v1230_v53, %v390_v61  ;;  %v1314_v15 = vpop.f32.mrb[0].mxu1  ;;  %v1071_v61 = vsel %vm311_vm0, %v1067_v62, 0.0 }
 0x13f   : > { %v414_v14 = vsel %vm311_vm0, %v410_v59, 0.0  ;;  %v434_v2 = vsel %vm311_vm0, %v430_v60, 0.0  ;;  %v549_v21 = vmul.f32 %v1314_v15, %v1314_v15  ;;  %v570_v22 = vmul.f32 %v1314_v15, %v1231_v51  ;;  %v529_v4 = vpop.f32.mrb[1].mxu1 }
 0x140   : > { %v413_v18 = vsel %vm311_vm0, %v409_v5, 0.0  ;;  %v433_v19 = vsel %vm311_vm0, %v429_v9, 0.0  ;;  %v1303_v20 = vpop.f32.mrb[2].mxu0  ;;  %v548_v32 = vmul.f32 %v529_v4, %v529_v4  ;;  %v569_v33 = vmul.f32 %v1230_v53, %v529_v4 }
 0x141   : > { %v415_v23 = vadd.f32 %v414_v14, %v413_v18  ;;  %v435_v24 = vadd.f32 %v434_v2, %v433_v19  ;;  %v432_v25 = vmul.f32 %v1303_v20, %v1233_v56  ;;  %v400_v26 = vpop.f32.mrb[3].mxu0  ;;  %v412_v28 = vmul.f32 %v1303_v20, %v1303_v20 }
 0x142   : > { %v411_v29 = vmul.f32 %v400_v26, %v400_v26  ;;  %v431_v30 = vmul.f32 %v1232_v57, %v400_v26  ;;  %v553_v13 = vsel %vm311_vm0, %v549_v21, 0.0  ;;  %v574_v31 = vsel %vm311_vm0, %v570_v22, 0.0  ;;  %v1317_v34 = vpop.f32.mrb[2].mxu1 }
 0x143   : > { %v438_v35 = vsel %vm311_vm0, %v432_v25, 0.0  ;;  %v551_v39 = vmul.f32 %v1317_v34, %v1317_v34  ;;  %v572_v40 = vmul.f32 %v1317_v34, %v1233_v56  ;;  %v539_v41 = vpop.f32.mrb[3].mxu1  ;;  %v552_v42 = vsel %vm311_vm0, %v548_v32, 0.0 }
 0x144   : > { %v416_v36 = vsel %vm311_vm0, %v411_v29, 0.0  ;;  %v436_v38 = vsel %vm311_vm0, %v431_v30, 0.0  ;;  %v573_v43 = vsel %vm311_vm0, %v569_v33, 0.0  ;;  %v550_v44 = vmul.f32 %v539_v41, %v539_v41 }
 0x145   : > { %v571_v45 = vmul.f32 %v1232_v57, %v539_v41  ;;  %v554_v46 = vadd.f32 %v553_v13, %v552_v42  ;;  %v575_v47 = vadd.f32 %v574_v31, %v573_v43  ;;  %v437_v48 = vadd.f32 %v436_v38, %v435_v24 }
 0x146   : > { %v418_v49 = vsel %vm311_vm0, %v412_v28, 0.0  ;;  %v555_v50 = vsel %vm311_vm0, %v550_v44, 0.0  ;;  %v557_v52 = vsel %vm311_vm0, %v551_v39, 0.0  ;;  %v417_v53 = vadd.f32 %v416_v36, %v415_v23 }
 0x147   : > { %v576_v51 = vsel %vm311_vm0, %v571_v45, 0.0  ;;  %v439_v54 = vadd.f32 %v438_v35, %v437_v48  ;;  %v556_v55 = vadd.f32 %v555_v50, %v554_v46  ;;  %v578_v59 = vsel %vm311_vm0, %v572_v40, 0.0 }
 0x148   : > { %v577_v56 = vadd.f32 %v576_v51, %v575_v47  ;;  %v1070_v60 = vsel %vm311_vm0, %v1066_v58, 0.0  ;;  %v419_v57 = vadd.f32 %v418_v49, %v417_v53  ;;  %v1068_v14 = vmul.f32 %v1064_v63, %v1064_v63 }
 0x149   : > { %440 = vadd.xlane.f32.xlu1 %v439_v54  ;;  %v558_v5 = vadd.f32 %v557_v52, %v556_v55  ;;  %v1065_v2 = vsub.f32 %v1057_v16, %v1061_v27  ;;  %v920_v15 = vmul.f32 %v1804_v7, %v1804_v7  ;;  %v924_v18 = vsel %vm311_vm0, %v919_v11, 0.0  ;;  %v1006_v16 = vpop.trf.xlu1 }
 0x14a   : > { %v579_v9 = vadd.f32 %v578_v59, %v577_v56  ;;  %420 = vadd.xlane.f32.xlu0 %v419_v57  ;;  %v925_v19 = vadd.f32 %v924_v18, %v923_v10  ;;  %v1072_v20 = vadd.f32 %v1071_v61, %v1070_v60  ;;  %v1073_v22 = vsel %vm311_vm0, %v1068_v14, 0.0 }
 0x14b   : > { %v1069_v21 = vmul.f32 %v1065_v2, %v1065_v2  ;;  %v926_v58 = vsel %vm311_vm0, %v920_v15, 0.0  ;;  %v1022_v11 = vmul.f32 %v1844_v12, %v1790_v1  ;;  %v1026_v17 = vmul.f32 %v1006_v16, %v1790_v1 }
 0x14c   : > { %v927_v62 = vadd.f32 %v926_v58, %v925_v19  ;;  %v1074_v4 = vadd.f32 %v1073_v22, %v1072_v20  ;;  %v1023_v23 = vmul.f32 %v1844_v12, %v1796_v3  ;;  %v1024_v36 = vmul.f32 %v1844_v12, %v1802_v6 }
 0x14d   : > { %559 = vadd.xlane.f32.xlu1 %v558_v5  ;;  %v1075_v0 = vsel %vm311_vm0, %v1069_v21, 0.0  ;;  %v1007_v7 = vpop.trf.xlu1  ;;  %v1030_v31 = vsub.f32 %v1022_v11, %v1026_v17  ;;  %v1025_v48 = vmul.f32 %v1844_v12, %v1806_v8 }
 0x14e   : > { %v1076_v63 = vadd.f32 %v1075_v0, %v1074_v4  ;;  %v1027_v24 = vmul.f32 %v1007_v7, %v1796_v3 }
 0x14f   : > { %v1034_v43 = vmul.f32 %v1030_v31, %v1030_v31 }
 0x150   : > { %v1031_v32 = vsub.f32 %v1023_v23, %v1027_v24 }
 0x151   : > { %580 = vadd.xlane.f32.xlu1 %v579_v9  ;;  %v1008_v25 = vpop.trf.xlu1  ;;  %v1038_v55 = vsel %vm311_vm0, %v1034_v43, 0.0 }
 0x152   : > { %v1028_v3 = vmul.f32 %v1008_v25, %v1802_v6  ;;  %v1035_v44 = vmul.f32 %v1031_v32, %v1031_v32 }
 0x154   : > { %v1032_v45 = vsub.f32 %v1024_v36, %v1028_v3  ;;  %v1039_v56 = vsel %vm311_vm0, %v1035_v44, 0.0 }
 0x155   : > { %928 = vadd.xlane.f32.xlu1 %v927_v62  ;;  %v1009_v42 = vpop.trf.xlu1  ;;  %v1040_v2 = vadd.f32 %v1039_v56, %v1038_v55 }
 0x156   : > { %v1029_v49 = vmul.f32 %v1009_v42, %v1806_v8  ;;  %v1036_v59 = vmul.f32 %v1032_v45, %v1032_v45 }
 0x158   : > { %v1033_v60 = vsub.f32 %v1025_v48, %v1029_v49  ;;  %v1041_v18 = vsel %vm311_vm0, %v1036_v59, 0.0 }
 0x159   : > { %1077 = vadd.xlane.f32.xlu1 %v1076_v63  ;;  %v1042_v19 = vadd.f32 %v1041_v18, %v1040_v2  ;;  %v757_v58 = vpop.xlane.xlu1 %756 }
 0x15a   : > { %v1037_v15 = vmul.f32 %v1033_v60, %v1033_v60 }
 0x15c   : > { %v1043_v20 = vsel %vm311_vm0, %v1037_v15, 0.0 }
 0x15d   : > { %v1044_v21 = vadd.f32 %v1043_v20, %v1042_v19 }
 0x1b7   : > { %v1342_v27 = vpop.f32.mrb[4].mxu1 }
 0x1b8   : > { %v1328_v26 = vpop.f32.mrb[4].mxu0  ;;  %v897_v30 = vmul.f32 %v1342_v27, %v1342_v27  ;;  %v877_v13 = vpop.f32.mrb[5].mxu1 }
 0x1b9   : > { %v726_v28 = vmul.f32 %v1328_v26, %v1328_v26  ;;  %v706_v29 = vpop.f32.mrb[5].mxu0  ;;  %v896_v34 = vmul.f32 %v877_v13, %v877_v13 }
 0x1ba   : > { %v725_v33 = vmul.f32 %v706_v29, %v706_v29  ;;  %v901_v1 = vsel %vm311_vm0, %v897_v30, 0.0 }
 0x1bb   : > { %v730_v35 = vsel %vm311_vm0, %v726_v28, 0.0  ;;  %v900_v39 = vsel %vm311_vm0, %v896_v34, 0.0 }
 0x1bc   : > { %v729_v38 = vsel %vm311_vm0, %v725_v33, 0.0  ;;  %v902_v41 = vadd.f32 %v901_v1, %v900_v39 }
 0x1bd   : > { %v731_v40 = vadd.f32 %v730_v35, %v729_v38 }
 0x1bf   : > { %v1345_v47 = vpop.f32.mrb[6].mxu1 }
 0x1c0   : > { %v1331_v46 = vpop.f32.mrb[6].mxu0  ;;  %v899_v50 = vmul.f32 %v1345_v47, %v1345_v47  ;;  %v887_v6 = vpop.f32.mrb[7].mxu1 }
 0x1c1   : > { %v716_v51 = vpop.f32.mrb[7].mxu0  ;;  %v728_v52 = vmul.f32 %v1331_v46, %v1331_v46  ;;  %v898_v54 = vmul.f32 %v887_v6, %v887_v6 }
 0x1c2   : > { %v727_v53 = vmul.f32 %v716_v51, %v716_v51  ;;  %v905_v12 = vsel %vm311_vm0, %v899_v50, 0.0 }
 0x1c3   : > { %v903_v61 = vsel %vm311_vm0, %v898_v54, 0.0  ;;  %v734_v9 = vsel %vm311_vm0, %v728_v52, 0.0 }
 0x1c4   : > { %v732_v57 = vsel %vm311_vm0, %v727_v53, 0.0  ;;  %v904_v8 = vadd.f32 %v903_v61, %v902_v41  ;;  %v758_v41 = vrot.slane %v757_v58, 4 }
 0x1c5   : > { %v733_v5 = vadd.f32 %v732_v57, %v731_v40 }
 0x1c6   : > { %v906_v14 = vadd.f32 %v905_v12, %v904_v8  ;;  %v759_v42 = vadd.f32 %v758_v41, %v757_v58 }
 0x1c7   : > { %v735_v10 = vadd.f32 %v734_v9, %v733_v5 }
 0x1c8   : > { %v760_v45 = vrot.slane %v759_v42, 2 }
 0x1c9   : > { %736 = vadd.xlane.f32.xlu0 %v735_v10 }
 0x1ca   : > { %v761_v53 = vadd.f32 %v760_v45, %v759_v42 }
 0x1cc   : > { %v762_v61 = vrot.slane %v761_v53, 1 }
 0x1cd   : > { %907 = vadd.xlane.f32.xlu0 %v906_v14 }
 0x1ce   : > { %v763_v18 = vadd.f32 %v762_v61, %v761_v53 }
 0x1d1   : > { %1045 = vadd.xlane.f32.xlu0 %v1044_v21 }
 0x1d6   : > { %v441_v22 = vpop.xlane.xlu1 %440 }
 0x1d7   : > { %v442_v62 = vrot.slane %v441_v22, 4  ;;  %v421_v4 = vpop.xlane.xlu0 %420 }
 0x1d8   : > { %v422_v0 = vrot.slane %v421_v4, 4 }
 0x1d9   : > { %v443_v63 = vadd.f32 %v442_v62, %v441_v22 }
 0x1da   : > { %v560_v16 = vpop.xlane.xlu1 %559  ;;  %v423_v7 = vadd.f32 %v422_v0, %v421_v4 }
 0x1db   : > { %v444_v11 = vrot.slane %v443_v63, 2  ;;  %v561_v17 = vrot.slane %v560_v16, 4 }
 0x1dc   : > { %v424_v23 = vrot.slane %v423_v7, 2 }
 0x1dd   : > { %v562_v24 = vadd.f32 %v561_v17, %v560_v16  ;;  %v445_v25 = vadd.f32 %v444_v11, %v443_v63 }
 0x1de   : > { %v581_v26 = vpop.xlane.xlu1 %580  ;;  %v425_v27 = vadd.f32 %v424_v23, %v423_v7 }
 0x1df   : > { %v563_v28 = vrot.slane %v562_v24, 2  ;;  %v582_v29 = vrot.slane %v581_v26, 4  ;;  %v446_v30 = vrot.slane %v445_v25, 1 }
 0x1e0   : > { %v426_v13 = vrot.slane %v425_v27, 1 }
 0x1e1   : > { %v583_v31 = vadd.f32 %v582_v29, %v581_v26  ;;  %v447_v32 = vadd.f32 %v446_v30, %v445_v25  ;;  %v564_v33 = vadd.f32 %v563_v28, %v562_v24 }
 0x1e2   : > { %v427_v34 = vadd.f32 %v426_v13, %v425_v27  ;;  %v929_v40 = vpop.xlane.xlu1 %928 }
 0x1e3   : > { %v584_v35 = vrot.slane %v583_v31, 2  ;;  %v565_v1 = vrot.slane %v564_v33, 1  ;;  %v930_v43 = vrot.slane %v929_v40, 4 }
 0x1e4   : > { %1378 = vpush %v427_v34 }
 0x1e5   : > { %1380 = vpush %v447_v32  ;;  %v566_v36 = vadd.f32 %v565_v1, %v564_v33  ;;  %v585_v3 = vadd.f32 %v584_v35, %v583_v31  ;;  %v931_v46 = vadd.f32 %v930_v43, %v929_v40 }
 0x1e6   : > { %v1078_v44 = vpop.xlane.xlu1 %1077 }
 0x1e7   : > { %1382 = vpush %v566_v36  ;;  %v586_v38 = vrot.slane %v585_v3, 1  ;;  %v1079_v47 = vrot.slane %v1078_v44, 4  ;;  %v932_v51 = vrot.slane %v931_v46, 2 }
 0x1e9   : > { %v587_v39 = vadd.f32 %v586_v38, %v585_v3  ;;  %v1080_v6 = vadd.f32 %v1079_v47, %v1078_v44  ;;  %v933_v12 = vadd.f32 %v932_v51, %v931_v46 }
 0x1eb   : > { %1384 = vpush %v587_v39  ;;  %v1081_v60 = vrot.slane %v1080_v6, 2  ;;  %v934_v19 = vrot.slane %v933_v12, 1 }
 0x1ed   : > { %v1082_v15 = vadd.f32 %v1081_v60, %v1080_v6  ;;  %v935_v62 = vadd.f32 %v934_v19, %v933_v12 }
 0x1ef   : > { %v1083_v4 = vrot.slane %v1082_v15, 1 }
 0x1f1   : > { %v1084_v16 = vadd.f32 %v1083_v4, %v1082_v15 }
 0x215   : > { %s1379_s5 = spop %1378 }
 0x216   : > { %s1381_s7 = spop %1380 }
 0x217   : > { %s449_s12 = smul.f32 2.0, %s1381_s7 }
 0x218   : > { %s1383_s14 = spop %1382 }
 0x219   : > { %s450_s30 = ssub.f32 %s1379_s5, %s449_s12 }
 0x21b   : > { %s568_s11 = sadd.f32 %s1383_s14, %s450_s30  ;;  %s1253_s14 = sshll.u32 %s1636_s19, 7 }
 0x21c   : > { %s1385_s23 = spop %1384  ;;  %s277_s30 = scalar_lea.vmem [#allocation7], %s1229_s2 }
 0x21d   : > { %s589_s29 = smul.f32 2.0, %s1385_s23  ;;  %s1589_s2 = smov [#allocation7]  }
 0x21e   : > { %s1516_s19 = sshll.u32 %s1589_s2, 4  ;;  %s1517_s19 = int_to_ptr.vmem [resolvable:$false] %s1516_s19 }
 0x21f   : > { %s590_s26 = ssub.f32 %s568_s11, %s589_s29  ;;  %s1518_s29 = scalar_lea.vmem %s1517_s19, 256 }
 0x221   : > { %s591_s8 = sadd.f32 64.0, %s590_s26 }
 0x223   : > { %v593_v7 = vstv %s591_s8 }
 0x224   : > { %v594_v17 = vsel %vm592_vm5, %v593_v7, 0.0 }
 0x256   : > { %v737_v48 = vpop.xlane.xlu0 %736 }
 0x257   : > { %v738_v49 = vrot.slane %v737_v48, 4 }
 0x259   : > { %v739_v50 = vadd.f32 %v738_v49, %v737_v48 }
 0x25a   : > { %v908_v52 = vpop.xlane.xlu0 %907 }
 0x25b   : > { %v740_v54 = vrot.slane %v739_v50, 2  ;;  %v909_v55 = vrot.slane %v908_v52, 4 }
 0x25d   : > { %v910_v56 = vadd.f32 %v909_v55, %v908_v52  ;;  %v741_v59 = vadd.f32 %v740_v54, %v739_v50 }
 0x25e   : > { %v1046_v57 = vpop.xlane.xlu0 %1045 }
 0x25f   : > { %v911_v5 = vrot.slane %v910_v56, 2  ;;  %v1047_v8 = vrot.slane %v1046_v57, 4  ;;  %v742_v9 = vrot.slane %v741_v59, 1 }
 0x261   : > { %v1048_v10 = vadd.f32 %v1047_v8, %v1046_v57  ;;  %v743_v14 = vadd.f32 %v742_v9, %v741_v59  ;;  %v912_v2 = vadd.f32 %v911_v5, %v910_v56 }
 0x263   : > { %v1049_v20 = vrot.slane %v1048_v10, 2  ;;  %1386 = vpush %v743_v14  ;;  %v913_v21 = vrot.slane %v912_v2, 1 }
 0x264   : > { %1388 = vpush %v763_v18 }
 0x265   : > { %v1050_v58 = vadd.f32 %v1049_v20, %v1048_v10  ;;  %v914_v22 = vadd.f32 %v913_v21, %v912_v2 }
 0x267   : > { %1390 = vpush %v914_v22  ;;  %v1051_v0 = vrot.slane %v1050_v58, 1 }
 0x268   : > { %1392 = vpush %v935_v62 }
 0x269   : > { %v1052_v63 = vadd.f32 %v1051_v0, %v1050_v58 }
 0x26b   : > { %1394 = vpush %v1052_v63 }
 0x26c   : > { %1396 = vpush %v1084_v16 }
 0x294   : > { %s1387_s13 = spop %1386 }
 0x295   : > { %s1389_s20 = spop %1388 }
 0x296   : > { %s765_s22 = smul.f32 2.0, %s1389_s20 }
 0x298   : > { %s766_s6 = ssub.f32 %s1387_s13, %s765_s22  ;;  %s1391_s9 = spop %1390 }
 0x299   : > { %s1393_s25 = spop %1392 }
 0x29a   : > { %s916_s0 = sadd.f32 %s1391_s9, %s766_s6  ;;  %s937_s1 = smul.f32 2.0, %s1393_s25 }
 0x29c   : > { %s938_s3 = ssub.f32 %s916_s0, %s937_s1  ;;  %s1395_s7 = spop %1394 }
 0x29d   : > { %s1397_s24 = spop %1396  ;;  %s1106_s0 = sshll.u32 %s277_s30, 4  ;;  %s1960_s0 = int_to_ptr.vmem [resolvable:$true] %s1106_s0 }
 0x29e   : > { %s939_s5 = sadd.f32 64.0, %s938_s3  ;;  %s1958_s3 = scalar_lea.hbm %s2006_s4, %s1253_s14 }
 0x29f   : > { %s1086_s12 = sadd.f32 %s1397_s24, %s1395_s7  ;;  %s1093_s24 = scalar_lea.sflag [#allocation4], %s1775_s10 }
 0x2a0   : > { %v941_v11 = vstv %s939_s5  ;;  %s1512_s11 = scalar_lea.vmem %s1960_s0, 128  ;;  %p1519_p7 = scmp.lt.s32.totalorder %s1960_s0, %s1517_s19 }
 0x2a1   : > { %v942_v23 = vsel %vm940_vm6, %v941_v11, 0.0  ;;  %v1088_v24 = vstv %s1086_s12  ;;  %p1513_p1 = scmp.ne.s32.totalorder %s1960_s0, %s1512_s11  ;;  %p1520_p9 = scmp.lt.s32.totalorder %s1518_s29, %s1512_s11 }
 0x2a2   : > { %v943_v25 = vadd.f32 %v942_v23, %v594_v17  ;;  %v1089_v26 = vsel %vm1087_vm7, %v1088_v24, 0.0 }
 0x2a3   : > { %p1514_p10 = pnand %p1513_p1, %p2025_p12  ;;  %p1521_p11 = por %p1520_p9, %p1519_p7 }
 0x2a4   : > { %v1090_v27 = vadd.f32 %v1089_v26, %v943_v25 }
 0x2a5   : > { %p1515_p5 = pneg %p1514_p10 }
 0x2a6   : > { %1091 = vst [vmem:[%s277_s30] sm:$0xff] %v1090_v27 }
 0x2a7   : > { %p1522_p3 = pnand %p1521_p11, %p1515_p5 }
 0x2a9   : > { %1525 = shalt.err (!%p1522_p3)
}
 0x2aa   : > { %s1526_s10 = scalar_lea.hbm %s1958_s3, 128  ;;  %s1530_s20 = scalar_lea.hbm %s2006_s4, 256 }
 0x2ab   : > { %p1527_p8 = scmp.ne.s32.totalorder %s1958_s3, %s1526_s10  ;;  %p1531_p4 = scmp.lt.u32.totalorder %s1958_s3, %s2006_s4 }
 0x2ac   : > { %p1532_p6 = scmp.lt.u32.totalorder %s1530_s20, %s1526_s10  ;;  %p1534_p1 = scmp.lt.u32.totalorder %s1526_s10, %s1958_s3 }
 0x2ad   : > { %p1528_p0 = pnand %p1527_p8, %p2025_p12 }
 0x2ae   : > { %p1533_p13 = por %p1532_p6, %p1531_p4 }
 0x2af   : > { %p1529_p2 = pneg %p1528_p0 }
 0x2b0   : > { %p1535_p10 = por %p1534_p1, %p1533_p13 }
 0x2b2   : > { %p1536_p5 = pnand %p1535_p10, %p1529_p2 }
 0x2b4   : > { %1539 = shalt.err (!%p1536_p5)
}
 0x2b5   : > { %1402 = dma.vmem_to_hbm [thread:$0]  (%p2025_p12), %s1960_s0, 128, %s1958_s3, %s1093_s24  }
 0x2b6 PF: > { %s1118_s9 = sand.u32 1, %s1570_s15   ;;  %p2026_p7 = scmp.ne.s32.totalorder %s2017_s28, 0 }
 0x2b7   : > { %p2027_p9 = scmp.ge.s32.totalorder %s1582_s18, 2  ;;  %s1119_s8 = scalar_lea.sflag [#allocation4], %s1118_s9 }
 0x2b9   : > { %p1412_p11 = pnand %p2027_p9, %p2026_p7 }
 0x2bb   : > { %1565 = dma.done.wait (!%p1412_p11), %s1119_s8, 128  }
 0x2bc   : > { %1567 = vsyncadd (!%p1412_p11), %s1119_s8, 4294967168  ;;  %s2028_s25 = sld [smem:[#allocation11_spill]]  ;;  %p20_p3 = scmp.ge.s32.totalorder %s1640_s21, 4  }
 0x2bd   : > { %s2029_s15 = smov %s1574_s16  ;;  %s2030_s16 = smov %s1578_s17 }
 0x2be   : > { %s2032_s18 = smov %s1640_s21  ;;  %22 = sbr.rel (!%p20_p3) target bundleno = 12 (0xc), region = 100 }
 0x2c2   : > { %s2031_s17 = smov %s2028_s25 }
 0x2c5   :  { %1124 = vsyncpa [#allocation3], 1 }
 0x2c6   :  { %1126 = vsyncpa [#allocation3 + $0x1], 1 }
 0x2c7   :  { %1127 = vsyncpa [#allocation6], 1 }
 0x2c8   :  { %1129 = vsyncpa [#allocation6 + $0x1], 1 }
 0x2c9   :  { %1130 = vsyncpa [#allocation4], 1 }
 0x2ca   :  { %1132 = vsyncpa [#allocation4 + $0x1], 1 }

</bundles_post_ra>
